<compile_context>
chip_gen: v7x
topology: tpu7x:2x2x1
jax: 0.10.0
libtpu: 0.0.40
codegen_flags: <defaults>
</compile_context>

<pallas_src>
import functools
import math

import jax
import jax.numpy as jnp
from jax.experimental import pallas as pl
from jax.experimental.pallas import tpu as pltpu


_SHIFT = math.log(2.0)  # == torch.log(torch.tensor(2.0)).item()
_LANES = 128

# Rough per-element (flops, transcendentals) for the advisory cost estimate.
_COST = {
    "relu": (1, 0), "leaky_relu": (2, 0), "softsign": (3, 0),
    "sp": (2, 2), "leaky_sp": (5, 2),
    "elu": (2, 1), "leaky_elu": (5, 1),
    "ssp": (3, 2), "leaky_ssp": (6, 2),
    "tanh": (1, 1), "leaky_tanh": (3, 1), "swish": (4, 1),
}


def _softplus(x):
    # beta=1 softplus, numerically stable (matches F.softplus; the PyTorch
    # threshold saturation is itself only a stability device).
    return jnp.logaddexp(x, 0.0)


def _act_kernel(x_ref, o_ref, *, act: str, slope: float):
    xin = x_ref[...]

    # Pure-VPU branches: compute in the native dtype (bf16 VALU on v6e/v7x).
    if act == "relu":
        o_ref[...] = jnp.maximum(xin, jnp.zeros_like(xin))
        return
    if act == "leaky_relu":
        # F.leaky_relu default negative_slope = 0.01
        o_ref[...] = jnp.where(xin >= 0, xin, xin * jnp.asarray(0.01, xin.dtype))
        return

    # Transcendental / divide branches: compute in f32, cast on store.
    x = xin.astype(jnp.float32)
    if act == "sp":
        y = _softplus(x)
    elif act == "leaky_sp":
        y = _softplus(x) - slope * jnp.maximum(-x, 0.0)
    elif act == "elu":
        y = jnp.where(x > 0, x, jnp.expm1(x))  # alpha = 1.0
    elif act == "leaky_elu":
        y = jnp.where(x > 0, x, jnp.expm1(x)) - slope * jnp.maximum(-x, 0.0)
    elif act == "ssp":
        y = _softplus(x) - _SHIFT
    elif act == "leaky_ssp":
        y = _softplus(x) - slope * jnp.maximum(-x, 0.0) - _SHIFT
    elif act == "tanh":
        y = jnp.tanh(x)
    elif act == "leaky_tanh":
        y = jnp.tanh(x) + slope * x
    elif act == "swish":
        # sigmoid(x) * x via the stable tanh identity: one EUP push, no
        # exp(-x) overflow, full f32 accuracy.
        y = 0.5 * x * (1.0 + jnp.tanh(0.5 * x))
    elif act == "softsign":
        y = x / (1.0 + jnp.abs(x))
    else:
        raise RuntimeError(f"Undefined activation called {act}")
    o_ref[...] = y.astype(o_ref.dtype)


def _choose_tile_rows(rows: int, sublane: int, itemsize: int) -> int:
    # ~4 MiB per block: f32 -> (8192, 128), bf16 -> (16384, 128). With input
    # and output each double-buffered that is 16 MiB resident, under the
    # explicit 32 MiB vmem_limit_bytes on every generation.
    target_bytes = 4 * 1024 * 1024
    tile_r = (target_bytes // (_LANES * itemsize)) // sublane * sublane
    tile_r = max(tile_r, sublane)

    # On inputs >= 2 MiB, cap the block so the grid has >= 4 steps: keeps both
    # v7x TensorCores busy and the DMA pipeline overlapped; each step is still
    # >= 512 KiB so the ~0.35 us per-step overhead stays negligible.
    total_bytes = rows * _LANES * itemsize
    if total_bytes >= (2 << 20):
        cap = max(sublane, (rows // 4) // sublane * sublane)
        tile_r = min(tile_r, cap)

    if tile_r >= rows:
        tile_r = rows  # single block == full array dims (always legal)
    return tile_r


def act_forward(x, act: str, slope: float = 0.05):
    """Apply the `Act` module's forward pass via a tiled Pallas TPU kernel."""
    if act not in _COST:
        raise RuntimeError(f"Undefined activation called {act}")

    orig_shape = x.shape
    orig_dtype = x.dtype
    total = x.size

    itemsize = jnp.dtype(orig_dtype).itemsize
    # Sublane packing: 8 rows/vreg for f32, 16 for bf16, 32 for 8-bit types.
    sublane = max(8, 32 // itemsize)

    # Pad only to a multiple of 128 (the lane-dense reshape requirement).
    # Partial last row-blocks are handled by the grid's masked tail store, so
    # no sublane*128 padding (and no extra HBM pass) is needed.
    flat = x.reshape(-1)
    padded_total = ((total + _LANES - 1) // _LANES) * _LANES
    if padded_total != total:
        flat = jnp.pad(flat, (0, padded_total - total))
    rows = padded_total // _LANES
    x2d = flat.reshape(rows, _LANES)

    tile_r = _choose_tile_rows(rows, sublane, itemsize)

    flops_pe, trans_pe = _COST[act]
    cost = pl.CostEstimate(
        flops=flops_pe * padded_total,
        transcendentals=trans_pe * padded_total,
        bytes_accessed=2 * padded_total * itemsize,
    )

    kernel = functools.partial(_act_kernel, act=act, slope=slope)
    out2d = pl.pallas_call(
        kernel,
        out_shape=jax.ShapeDtypeStruct((rows, _LANES), orig_dtype),
        grid=(pl.cdiv(rows, tile_r),),
        in_specs=[pl.BlockSpec((tile_r, _LANES), lambda i: (i, 0))],
        out_specs=pl.BlockSpec((tile_r, _LANES), lambda i: (i, 0)),
        compiler_params=pltpu.CompilerParams(
            dimension_semantics=("parallel",),   # shard grid across TCs on v7x
            vmem_limit_bytes=32 * 1024 * 1024,   # 4 MiB blocks need > v5e's 16 MiB default
        ),
        cost_estimate=cost,
    )(x2d)

    out = out2d.reshape(-1)
    if padded_total != total:
        out = out[:total]
    return out.reshape(orig_shape)


def _reference(x, act, slope=0.05):
    # Pure-JAX reference mirroring the PyTorch forward, for correctness check.
    xf = x.astype(jnp.float32)
    sp = jnp.logaddexp(xf, 0.0)
    relu_neg = jnp.maximum(-xf, 0.0)
    elu = jnp.where(xf > 0, xf, jnp.expm1(xf))
    ref = {
        "relu": jnp.maximum(xf, 0.0),
        "leaky_relu": jnp.where(xf >= 0, xf, 0.01 * xf),
        "sp": sp,
        "leaky_sp": sp - slope * relu_neg,
        "elu": elu,
        "leaky_elu": elu - slope * relu_neg,
        "ssp": sp - _SHIFT,
        "leaky_ssp": sp - slope * relu_neg - _SHIFT,
        "tanh": jnp.tanh(xf),
        "leaky_tanh": jnp.tanh(xf) + slope * xf,
        "swish": jax.nn.sigmoid(xf) * xf,
        "softsign": xf / (1.0 + jnp.abs(xf)),
    }[act]
    return ref.astype(x.dtype)


if __name__ == "__main__":
    key = jax.random.PRNGKey(0)
    acts = [
        "relu", "leaky_relu", "sp", "leaky_sp", "elu", "leaky_elu",
        "ssp", "leaky_ssp", "tanh", "leaky_tanh", "swish", "softsign",
    ]

    k1, k2, k3 = jax.random.split(key, 3)
    # Small NCHW-style input, consistent with an elementwise activation module.
    x = jax.random.normal(k1, (2, 4, 16, 16), dtype=jnp.float32) * 2.0
    # Odd-sized input to exercise the pad-to-128 / single partial-block path.
    x_odd = jax.random.normal(k2, (3, 5, 7), dtype=jnp.float32) * 2.0

    for a in acts:
        for inp in (x, x_odd):
            out = jax.block_until_ready(act_forward(inp, a))
            ref = _reference(inp, a)
            assert out.shape == inp.shape and out.dtype == inp.dtype
            if not jnp.allclose(out, ref, atol=1e-4, rtol=1e-4):
                raise AssertionError(f"mismatch for act={a}, shape={inp.shape}")

    # Mid-size input (~3 MiB) to exercise the multi-step grid / >=4-step cap.
    x_mid = jax.random.normal(k3, (48, 128, 128), dtype=jnp.float32)
    for a in ("relu", "sp", "tanh", "swish"):
        out = jax.block_until_ready(act_forward(x_mid, a))
        if not jnp.allclose(out, _reference(x_mid, a), atol=1e-4, rtol=1e-4):
            raise AssertionError(f"mismatch for act={a}, shape={x_mid.shape}")

    # bf16 smoke test (sublane=16 path); loose tolerance for bf16 rounding.
    xb = x.astype(jnp.bfloat16)
    outb = jax.block_until_ready(act_forward(xb, "swish"))
    assert outb.shape == xb.shape and outb.dtype == xb.dtype
    if not jnp.allclose(outb.astype(jnp.float32),
                        _reference(x, "swish"), atol=5e-2, rtol=5e-2):
        raise AssertionError("mismatch for bf16 swish")

    print("KERNEL_OK")
</pallas_src>

<mosaic_0001>
module attributes {stable_mosaic.version = 11 : i64} {
  func.func @_act_kernel(%arg0: i32, %arg1: memref<16x128xf32, #tpu.memory_space<vmem>>, %arg2: memref<16x128xf32, #tpu.memory_space<vmem>>) attributes {dimension_semantics = [#tpu.dimension_semantics<parallel>], iteration_bounds = array<i64: 1>, scalar_prefetch = 0 : i64, scratch_operands = 0 : i64, tpu.core_type = #tpu.core_type<tc>, window_params = [{transform_indices = @transform_0, window_bounds = array<i64: 16, 128>}, {transform_indices = @transform_1, window_bounds = array<i64: 16, 128>}]} {
    %c0 = arith.constant 0 : index
    %c0_0 = arith.constant 0 : index
    %0 = vector.load %arg1[%c0, %c0_0] : memref<16x128xf32, #tpu.memory_space<vmem>>, vector<16x128xf32>
    %cst = arith.constant 0.000000e+00 : f32
    %1 = vector.broadcast %cst : f32 to vector<16x128xf32>
    %2 = arith.maximumf %0, %1 : vector<16x128xf32>
    %c0_1 = arith.constant 0 : index
    %c0_2 = arith.constant 0 : index
    %3 = vector.load %arg2[%c0_1, %c0_2] : memref<16x128xf32, #tpu.memory_space<vmem>>, vector<16x128xf32>
    tpu.vector_store %arg2[%c0_1, %c0_2], %2 {strides = array<i32>} : memref<16x128xf32, #tpu.memory_space<vmem>>, vector<16x128xf32>,
    return
  }
  func.func @transform_0(%arg0: i32) -> (i32, i32) {
    %c0_i32 = arith.constant 0 : i32
    %c0_i32_0 = arith.constant 0 : i32
    return %arg0, %c0_i32 : i32, i32
  }
  func.func @transform_1(%arg0: i32) -> (i32, i32) {
    %c0_i32 = arith.constant 0 : i32
    %c0_i32_0 = arith.constant 0 : i32
    return %arg0, %c0_i32 : i32, i32
  }
}

</mosaic_0001>

<bundles_post_ra>
// kernel: tpu_custom_call.1
= control target key start
LH: loop header
LB: loop body
LE: loop exit
PB: predicated region body
PF: predicated region fallthrough
CT: control target
= control target key end

     0   :  { %6 = vsyncpa [#allocation3], 0  ;;  %s136_s0 = inlined_call_operand.hbm [shape: f32[16,128], index: 0, kind: input, shape index: {}]   ;;  %s137_s1 = inlined_call_operand.hbm [shape: f32[16,128], index: 1, kind: output, shape index: {}]  }
   0x1   :  { %7 = vsyncpa [#allocation4], 0  ;;  %s98_s6 = smov [#allocation2]   ;;  %s50_s10 = scalar_lea.hbm %s136_s0, 256 }
   0x2   :  { %s13_s7 = sshll.u32 %s98_s6, 4  ;;  %p51_p0 = scmp.ne.s32.totalorder %s136_s0, %s50_s10  ;;  %s14_s7 = int_to_ptr.vmem [resolvable:$true] %s13_s7 }
   0x3   :  { %p54_p1 = scmp.lt.u32.totalorder %s50_s10, %s136_s0 }
   0x5   :  { %p56_p2 = pnand %p54_p1, %p51_p0 }
   0x7   :  { %59 = shalt.err (!%p56_p2)
}
   0x8   :  { %s60_s15 = scalar_lea.vmem %s14_s7, 256  ;;  %p65_p4 = scmp.lt.s32.totalorder %s14_s7, %s14_s7 }
   0x9   :  { %p61_p3 = scmp.ne.s32.totalorder %s14_s7, %s60_s15  ;;  %p66_p5 = scmp.lt.s32.totalorder %s60_s15, %s60_s15 }
   0xb   :  { %p67_p6 = por %p66_p5, %p65_p4 }
   0xd   :  { %p68_p7 = pnand %p67_p6, %p61_p3 }
   0xf   :  { %71 = shalt.err (!%p68_p7)
}
  0x10   :  { %s99_s16 = smov 128   ;;  %s100_s17 = smov 8  }
  0x11   :  { %19 = dma.hbm_to_vmem [thread:$0]  %s136_s0, 256, %s14_s7, [#allocation3], %s99_s16, %s99_s16, %s100_s17  }
  0x12   :  { %94 = dma.done.wait [#allocation3], 256  }
  0x13   :  { %95 = vsyncadd [#allocation3], 4294967040  ;;  %s101_s20 = smov [#allocation5]   ;;  %v23_v0 = vld [vmem:[#allocation2] sm:$0xff]  ;;  %v24_v1 = vld [vmem:[#allocation2 + $0x8] sm:$0xff] }
  0x14   :  { %s34_s21 = sshll.u32 %s101_s20, 4  ;;  %v25_v2 = vmax.f32 %v23_v0, 0.0  ;;  %v26_v3 = vmax.f32 %v24_v1, 0.0  ;;  %s35_s21 = int_to_ptr.vmem [resolvable:$true] %s34_s21 }
  0x15   :  { %s72_s22 = scalar_lea.vmem %s35_s21, 256  ;;  %p77_p9 = scmp.lt.s32.totalorder %s35_s21, %s35_s21 }
  0x16   :  { %27 = vst [vmem:[#allocation5] sm:$0xff] %v25_v2  ;;  %28 = vst [vmem:[#allocation5 + $0x8] sm:$0xff] %v26_v3  ;;  %p73_p8 = scmp.ne.s32.totalorder %s35_s21, %s72_s22  ;;  %p78_p10 = scmp.lt.s32.totalorder %s72_s22, %s72_s22 }
  0x18   :  { %p79_p11 = por %p78_p10, %p77_p9 }
  0x1a   :  { %p80_p12 = pnand %p79_p11, %p73_p8 }
  0x1c   :  { %83 = shalt.err (!%p80_p12)
}
  0x1d   :  { %s84_s24 = scalar_lea.hbm %s137_s1, 256 }
  0x1e   :  { %p85_p13 = scmp.ne.s32.totalorder %s137_s1, %s84_s24  ;;  %p88_p0 = scmp.lt.u32.totalorder %s84_s24, %s137_s1 }
  0x20   :  { %p90_p1 = pnand %p88_p0, %p85_p13 }
  0x22   :  { %93 = shalt.err (!%p90_p1)
}
  0x23   :  { %40 = dma.vmem_to_hbm [thread:$0]  %s35_s21, 256, %s137_s1, [#allocation4], %s99_s16, %s99_s16, %s100_s17  }
  0x24   :  { %96 = dma.done.wait [#allocation4], 256  }
  0x25   :  { %97 = vsyncadd [#allocation4], 4294967040 }
  0x26   :  { %44 = vsyncpa [#allocation3], 1 }
  0x27   :  { %45 = vsyncpa [#allocation4], 1 }

</bundles_post_ra>
